<compile_context>
chip_gen: v6e
topology: v6e:2x2x1
jax: 0.10.0
libtpu: 0.0.40
codegen_flags: <defaults>
</compile_context>

<pallas_src>
import functools

import jax
import jax.numpy as jnp
from jax.experimental import pallas as pl
from jax.experimental.pallas import tpu as pltpu


def _round_up(x, m):
    return (x + m - 1) // m * m


# ----------------------------- Pallas kernels ------------------------------

def _matmul_kernel(a_ref, b_ref, o_ref, acc_ref):
    @pl.when(pl.program_id(2) == 0)
    def _():
        acc_ref[...] = jnp.zeros_like(acc_ref)

    acc_ref[...] += jnp.dot(a_ref[...], b_ref[...],
                            preferred_element_type=jnp.float32)

    @pl.when(pl.program_id(2) == pl.num_programs(2) - 1)
    def _():
        o_ref[...] = acc_ref[...].astype(o_ref.dtype)


def _matmul_bias_kernel(a_ref, b_ref, bias_ref, o_ref, acc_ref):
    @pl.when(pl.program_id(2) == 0)
    def _():
        acc_ref[...] = jnp.zeros_like(acc_ref)

    acc_ref[...] += jnp.dot(a_ref[...], b_ref[...],
                            preferred_element_type=jnp.float32)

    @pl.when(pl.program_id(2) == pl.num_programs(2) - 1)
    def _():
        o_ref[...] = (acc_ref[...] + bias_ref[...]).astype(o_ref.dtype)


def _bn_stats_kernel(x_ref, sum_ref, ssq_ref):
    # Grid-carried per-channel sum / sum-of-squares reduction over row tiles.
    @pl.when(pl.program_id(0) == 0)
    def _():
        sum_ref[...] = jnp.zeros_like(sum_ref)
        ssq_ref[...] = jnp.zeros_like(ssq_ref)

    x = x_ref[...].astype(jnp.float32)
    sum_ref[...] += jnp.sum(x, axis=0, keepdims=True)
    ssq_ref[...] += jnp.sum(x * x, axis=0, keepdims=True)


def _scale_shift_kernel(x_ref, scale_ref, shift_ref, o_ref, *, relu):
    y = x_ref[...].astype(jnp.float32) * scale_ref[...] + shift_ref[...]
    if relu:
        y = jnp.maximum(y, 0.0)
    o_ref[...] = y.astype(o_ref.dtype)


def _scale_shift_add_kernel(x_ref, res_ref, scale_ref, shift_ref, o_ref, *, relu):
    y = (x_ref[...].astype(jnp.float32) * scale_ref[...] + shift_ref[...]
         + res_ref[...].astype(jnp.float32))
    if relu:
        y = jnp.maximum(y, 0.0)
    o_ref[...] = y.astype(o_ref.dtype)


def _max3_kernel(a_ref, b_ref, c_ref, o_ref):
    o_ref[...] = jnp.maximum(jnp.maximum(a_ref[...], b_ref[...]), c_ref[...])


def _global_avg_pool_kernel(x_ref, o_ref):
    # x: (N, H*W, C) -> mean over the spatial axis (== F.avg_pool2d(x, x.size()[2:]))
    o_ref[...] = jnp.mean(x_ref[...].astype(jnp.float32), axis=1)


# ------------------------------ Pallas wrappers -----------------------------

_TM = 256                       # row tile for matmuls (safe on v5e/v6e/v7x VMEM)
_TN_CANDIDATES = (256, 128)     # 128-aligned lane-dense output tiles
_TK_CANDIDATES = (512, 384, 256, 128)
_ELEM_TM = 256                  # row tile for elementwise / BN kernels


def pallas_matmul(a, b, bias=None, out_dtype=jnp.bfloat16):
    """(M, K) @ (K, N) [+ bias]: tiled MXU kernel, bf16 inputs, f32 accumulation."""
    M, K = a.shape
    K2, N = b.shape
    assert K == K2

    tm = _TM if M >= _TM else _round_up(M, 8)
    Mp = _round_up(M, tm)
    Np = _round_up(N, 128)
    tn = next(t for t in _TN_CANDIDATES if Np % t == 0)
    Kp = _round_up(K, 128)
    tk = next(t for t in _TK_CANDIDATES if Kp % t == 0)

    a_p = jnp.pad(a.astype(jnp.bfloat16), ((0, Mp - M), (0, Kp - K)))
    b_p = jnp.pad(b.astype(jnp.bfloat16), ((0, Kp - K), (0, Np - N)))
    grid = (Mp // tm, Np // tn, Kp // tk)

    in_specs = [
        pl.BlockSpec((tm, tk), lambda i, j, k: (i, k)),
        pl.BlockSpec((tk, tn), lambda i, j, k: (k, j)),
    ]
    operands = [a_p, b_p]
    if bias is None:
        kernel = _matmul_kernel          # no zero-bias DMA / add for convs
    else:
        kernel = _matmul_bias_kernel
        bias_p = jnp.pad(bias.astype(jnp.float32).reshape(1, N),
                         ((0, 0), (0, Np - N)))
        in_specs.append(pl.BlockSpec((1, tn), lambda i, j, k: (0, j)))
        operands.append(bias_p)

    cost = pl.CostEstimate(flops=2 * Mp * Np * Kp, transcendentals=0,
                           bytes_accessed=2 * (Mp * Kp + Kp * Np + Mp * Np))

    out = pl.pallas_call(
        kernel,
        grid=grid,
        in_specs=in_specs,
        out_specs=pl.BlockSpec((tm, tn), lambda i, j, k: (i, j)),
        out_shape=jax.ShapeDtypeStruct((Mp, Np), out_dtype),
        scratch_shapes=[pltpu.VMEM((tm, tn), jnp.float32)],
        compiler_params=pltpu.CompilerParams(
            dimension_semantics=("parallel", "parallel", "arbitrary")),
        cost_estimate=cost,
    )(*operands)

    if Mp != M or Np != N:
        out = out[:M, :N]
    return out


def _row_tiles(M):
    tm = _ELEM_TM if M >= _ELEM_TM else _round_up(M, 8)
    return tm, _round_up(M, tm)


def batch_norm_act(x, bn, relu, residual=None, eps=1e-5):
    """Training-mode BatchNorm2d (batch stats, biased variance, affine) with
    optional fused residual add and ReLU.  Two tiled Pallas passes."""
    N, H, W, C = x.shape
    M = N * H * W
    x2 = x.reshape(M, C)
    tm, Mp = _row_tiles(M)
    x2p = jnp.pad(x2, ((0, Mp - M), (0, 0)))   # zero rows don't change sums

    s, ss = pl.pallas_call(
        _bn_stats_kernel,
        grid=(Mp // tm,),
        in_specs=[pl.BlockSpec((tm, C), lambda i: (i, 0))],
        out_specs=(pl.BlockSpec((1, C), lambda i: (0, 0)),
                   pl.BlockSpec((1, C), lambda i: (0, 0))),
        out_shape=(jax.ShapeDtypeStruct((1, C), jnp.float32),
                   jax.ShapeDtypeStruct((1, C), jnp.float32)),
        compiler_params=pltpu.CompilerParams(dimension_semantics=("arbitrary",)),
    )(x2p)

    # One-pass variance: E[x^2] - E[x]^2 (f32), folded into scale/shift (C-sized glue).
    mean = s / M
    var = jnp.maximum(ss / M - mean * mean, 0.0)
    scale = bn["gamma"].reshape(1, C) * jax.lax.rsqrt(var + eps)
    shift = bn["beta"].reshape(1, C) - mean * scale

    if residual is None:
        kernel = functools.partial(_scale_shift_kernel, relu=relu)
        operands = (x2p, scale, shift)
        in_specs = [pl.BlockSpec((tm, C), lambda i: (i, 0)),
                    pl.BlockSpec((1, C), lambda i: (0, 0)),
                    pl.BlockSpec((1, C), lambda i: (0, 0))]
    else:
        r2p = jnp.pad(residual.reshape(M, C), ((0, Mp - M), (0, 0)))
        kernel = functools.partial(_scale_shift_add_kernel, relu=relu)
        operands = (x2p, r2p, scale, shift)
        in_specs = [pl.BlockSpec((tm, C), lambda i: (i, 0)),
                    pl.BlockSpec((tm, C), lambda i: (i, 0)),
                    pl.BlockSpec((1, C), lambda i: (0, 0)),
                    pl.BlockSpec((1, C), lambda i: (0, 0))]

    out = pl.pallas_call(
        kernel,
        grid=(Mp // tm,),
        in_specs=in_specs,
        out_specs=pl.BlockSpec((tm, C), lambda i: (i, 0)),
        out_shape=jax.ShapeDtypeStruct((Mp, C), jnp.bfloat16),
        compiler_params=pltpu.CompilerParams(dimension_semantics=("parallel",)),
    )(*operands)
    return out[:M].reshape(N, H, W, C)


def conv2d(x, w, stride, pad):
    """NHWC conv, bias-free (ResNet convs).  x: (N,H,W,Cin), w: (KH,KW,Cin,Cout)."""
    N, H, W, Cin = x.shape
    KH, KW, _, Cout = w.shape
    OH = (H + 2 * pad - KH) // stride + 1
    OW = (W + 2 * pad - KW) // stride + 1

    if KH == 1 and KW == 1 and pad == 0:
        # 1x1 conv: no im2col at all, just a (strided) reshape + tiled matmul.
        xs = x[:, ::stride, ::stride, :] if stride > 1 else x
        a = xs.reshape(N * OH * OW, Cin)
        out = pallas_matmul(a, w.reshape(Cin, Cout))
        return out.reshape(N, OH, OW, Cout)

    # TODO(synk): replace the bf16 im2col materialization with shifted-window
    #             BlockSpecs (tap-indexed K grid axis) to remove the KH*KW x
    #             HBM amplification for 3x3 / 7x7 convs.
    xp = jnp.pad(x.astype(jnp.bfloat16),
                 ((0, 0), (pad, pad), (pad, pad), (0, 0)))
    cols = []
    for i in range(KH):
        for j in range(KW):
            cols.append(
                xp[:, i:i + (OH - 1) * stride + 1:stride,
                      j:j + (OW - 1) * stride + 1:stride, :])
    patches = jnp.concatenate(cols, axis=-1)             # (N, OH, OW, KH*KW*Cin)
    a = patches.reshape(N * OH * OW, KH * KW * Cin)
    out = pallas_matmul(a, w.reshape(KH * KW * Cin, Cout))
    return out.reshape(N, OH, OW, Cout)


def _max3_tiled(a, b, c):
    M, C = a.shape
    tm, Mp = _row_tiles(M)
    padcfg = ((0, Mp - M), (0, 0))
    ap, bp, cp = (jnp.pad(t, padcfg) for t in (a, b, c))
    out = pl.pallas_call(
        _max3_kernel,
        grid=(Mp // tm,),
        in_specs=[pl.BlockSpec((tm, C), lambda i: (i, 0))] * 3,
        out_specs=pl.BlockSpec((tm, C), lambda i: (i, 0)),
        out_shape=jax.ShapeDtypeStruct((Mp, C), a.dtype),
        compiler_params=pltpu.CompilerParams(dimension_semantics=("parallel",)),
    )(ap, bp, cp)
    return out[:M]


def max_pool_3x3_s2(x):
    """nn.MaxPool2d(kernel_size=3, stride=2, padding=1) as two separable
    3-tap max passes (W then H), each a row-tiled Pallas kernel."""
    N, H, W, C = x.shape
    k, s, p = 3, 2, 1
    OH = (H + 2 * p - k) // s + 1
    OW = (W + 2 * p - k) // s + 1
    Hp = H + 2 * p
    xp = jnp.pad(x, ((0, 0), (p, p), (p, p), (0, 0)), constant_values=-jnp.inf)

    wv = [xp[:, :, j:j + (OW - 1) * s + 1:s, :].reshape(N * Hp * OW, C)
          for j in range(k)]
    pw = _max3_tiled(*wv).reshape(N, Hp, OW, C)

    hv = [pw[:, i:i + (OH - 1) * s + 1:s, :, :].reshape(N * OH * OW, C)
          for i in range(k)]
    return _max3_tiled(*hv).reshape(N, OH, OW, C)


def global_avg_pool(x):
    N, H, W, C = x.shape
    x2 = x.reshape(N, H * W, C)
    return pl.pallas_call(
        _global_avg_pool_kernel,
        grid=(1,),
        in_specs=[pl.BlockSpec((N, H * W, C), lambda i: (0, 0, 0))],
        out_specs=pl.BlockSpec((N, C), lambda i: (0, 0)),
        out_shape=jax.ShapeDtypeStruct((N, C), jnp.float32),
    )(x2)


# ------------------------------ Parameters ----------------------------------

LAYER_CFG = ((64, 3, 1), (128, 4, 2), (256, 6, 2), (512, 3, 2))  # (planes, blocks, stride)


class _ParamGen:
    def __init__(self, key):
        self._key = key
        self._count = 0

    def normal(self, shape, scale=0.05):
        self._count += 1
        k = jax.random.fold_in(self._key, self._count)
        return scale * jax.random.normal(k, shape, jnp.float32)


def _bn_params(c):
    return {"gamma": jnp.ones((c,), jnp.float32),
            "beta": jnp.zeros((c,), jnp.float32)}


def init_resnet50_params(key, num_classes):
    pg = _ParamGen(key)
    params = {
        "conv1": pg.normal((7, 7, 3, 64)),
        "bn1": _bn_params(64),
    }
    inplanes = 64
    for li, (planes, blocks, stride) in enumerate(LAYER_CFG):
        layer = []
        for bi in range(blocks):
            s = stride if bi == 0 else 1
            downsample = (bi == 0) and (s != 1 or inplanes != planes * 4)
            blk = {
                "conv1": pg.normal((1, 1, inplanes, planes)),
                "bn1": _bn_params(planes),
                "conv2": pg.normal((3, 3, planes, planes)),
                "bn2": _bn_params(planes),
                "conv3": pg.normal((1, 1, planes, planes * 4)),
                "bn3": _bn_params(planes * 4),
            }
            if downsample:
                blk["down_conv"] = pg.normal((1, 1, inplanes, planes * 4))
                blk["down_bn"] = _bn_params(planes * 4)
            layer.append(blk)
            inplanes = planes * 4
        params["layer%d" % (li + 1)] = layer
    params["fc_w"] = pg.normal((2048, num_classes))   # stored as (in, out) == W.T
    params["fc_b"] = jnp.zeros((num_classes,), jnp.float32)
    return params


# ------------------------------- Forward ------------------------------------

def bottleneck_forward(x, p, stride):
    identity = x
    out = conv2d(x, p["conv1"], stride=1, pad=0)
    out = batch_norm_act(out, p["bn1"], relu=True)
    out = conv2d(out, p["conv2"], stride=stride, pad=1)
    out = batch_norm_act(out, p["bn2"], relu=True)
    out = conv2d(out, p["conv3"], stride=1, pad=0)
    if "down_conv" in p:
        identity = conv2d(x, p["down_conv"], stride=stride, pad=0)
        identity = batch_norm_act(identity, p["down_bn"], relu=False)
    # bn3 + residual add + ReLU fused in one tiled kernel
    return batch_norm_act(out, p["bn3"], relu=True, residual=identity)


def resnet50_forward(x_nchw, params, training=True):
    """Matches ResNet50.forward: features f in eval mode, logits y in train mode."""
    x = jnp.transpose(x_nchw, (0, 2, 3, 1)).astype(jnp.bfloat16)  # NCHW -> NHWC
    # stem
    x = conv2d(x, params["conv1"], stride=2, pad=3)
    x = batch_norm_act(x, params["bn1"], relu=True)
    x = max_pool_3x3_s2(x)
    # stages
    for li, (planes, blocks, stride) in enumerate(LAYER_CFG):
        layer = params["layer%d" % (li + 1)]
        for bi in range(blocks):
            s = stride if bi == 0 else 1
            x = bottleneck_forward(x, layer[bi], s)
    # x = F.avg_pool2d(x, x.size()[2:]); f = x.view(N, -1)
    f = global_avg_pool(x)                                        # (N, 2048) f32
    if not training:
        return f
    # y = self.classifier(f)
    y = pallas_matmul(f, params["fc_w"], params["fc_b"], out_dtype=jnp.float32)
    return y


# --------------------------------- Main --------------------------------------

if __name__ == "__main__":
    num_classes = 10
    key = jax.random.PRNGKey(0)
    params = init_resnet50_params(key, num_classes)

    x = jax.random.normal(jax.random.fold_in(key, 999), (2, 3, 16, 16), jnp.float32)

    # Module default is training mode -> forward returns classifier logits.
    y = jax.block_until_ready(resnet50_forward(x, params, training=True))
    assert y.shape == (2, num_classes), y.shape
    assert bool(jnp.all(jnp.isfinite(y)))

    # Eval-mode path (returns pooled 2048-d features), exercised as well.
    f = jax.block_until_ready(resnet50_forward(x, params, training=False))
    assert f.shape == (2, 2048), f.shape

    print("KERNEL_OK")
</pallas_src>

<mosaic_0001>
module attributes {stable_mosaic.version = 11 : i64} {
  func.func @_matmul_kernel(%arg0: i32, %arg1: i32, %arg2: i32, %arg3: memref<128x256xbf16, #tpu.memory_space<vmem>>, %arg4: memref<256x128xbf16, #tpu.memory_space<vmem>>, %arg5: memref<128x128xbf16, #tpu.memory_space<vmem>>, %arg6: memref<128x128xf32, #tpu.memory_space<vmem>>) attributes {dimension_semantics = [#tpu.dimension_semantics<parallel>, #tpu.dimension_semantics<parallel>, #tpu.dimension_semantics<arbitrary>], iteration_bounds = array<i64: 1, 1, 1>, scalar_prefetch = 0 : i64, scratch_operands = 1 : i64, tpu.core_type = #tpu.core_type<tc>, window_params = [{transform_indices = @transform_0, window_bounds = array<i64: 128, 256>}, {transform_indices = @transform_1, window_bounds = array<i64: 256, 128>}, {transform_indices = @transform_2, window_bounds = array<i64: 128, 128>}]} {
    %c0_i32 = arith.constant 0 : i32
    %0 = arith.cmpi eq, %arg2, %c0_i32 : i32
    %1 = arith.extui %0 : i1 to i32
    %c0_i32_0 = arith.constant 0 : i32
    %2 = arith.cmpi ne, %1, %c0_i32_0 : i32
    scf.if %2 {
      %cst_10 = arith.constant 0.000000e+00 : f32
      %12 = vector.broadcast %cst_10 : f32 to vector<128x128xf32>
      %c0_11 = arith.constant 0 : index
      %c0_12 = arith.constant 0 : index
      %13 = vector.load %arg6[%c0_11, %c0_12] : memref<128x128xf32, #tpu.memory_space<vmem>>, vector<128x128xf32>
      tpu.vector_store %arg6[%c0_11, %c0_12], %12 {strides = array<i32>} : memref<128x128xf32, #tpu.memory_space<vmem>>, vector<128x128xf32>,
    } else {
    }
    %c0 = arith.constant 0 : index
    %c0_1 = arith.constant 0 : index
    %3 = vector.load %arg6[%c0, %c0_1] : memref<128x128xf32, #tpu.memory_space<vmem>>, vector<128x128xf32>
    %c0_2 = arith.constant 0 : index
    %c0_3 = arith.constant 0 : index
    %4 = vector.load %arg3[%c0_2, %c0_3] : memref<128x256xbf16, #tpu.memory_space<vmem>>, vector<128x256xbf16>
    %c0_4 = arith.constant 0 : index
    %c0_5 = arith.constant 0 : index
    %5 = vector.load %arg4[%c0_4, %c0_5] : memref<256x128xbf16, #tpu.memory_space<vmem>>, vector<256x128xbf16>
    %cst = arith.constant dense<0.000000e+00> : vector<128x128xf32>
    %6 = tpu.matmul %4, %5, %cst {dimension_numbers = #tpu.dot_dimension_numbers<[1], [0], [0], [1], [0, 0, 1, 1], [], []>} : vector<128x256xbf16>, vector<256x128xbf16>, vector<128x128xf32> -> vector<128x128xf32>
    %7 = arith.addf %3, %6 : vector<128x128xf32>
    %c0_6 = arith.constant 0 : index
    %c0_7 = arith.constant 0 : index
    %8 = vector.load %arg6[%c0_6, %c0_7] : memref<128x128xf32, #tpu.memory_space<vmem>>, vector<128x128xf32>
    tpu.vector_store %arg6[%c0_6, %c0_7], %7 {strides = array<i32>} : memref<128x128xf32, #tpu.memory_space<vmem>>, vector<128x128xf32>,
    %c0_i32_8 = arith.constant 0 : i32
    %9 = arith.cmpi eq, %arg2, %c0_i32_8 : i32
    %10 = arith.extui %9 : i1 to i32
    %c0_i32_9 = arith.constant 0 : i32
    %11 = arith.cmpi ne, %10, %c0_i32_9 : i32
    scf.if %11 {
      %c0_10 = arith.constant 0 : index
      %c0_11 = arith.constant 0 : index
      %12 = vector.load %arg6[%c0_10, %c0_11] : memref<128x128xf32, #tpu.memory_space<vmem>>, vector<128x128xf32>
      %13 = arith.truncf %12 : vector<128x128xf32> to vector<128x128xbf16>
      %c0_12 = arith.constant 0 : index
      %c0_13 = arith.constant 0 : index
      %14 = vector.load %arg5[%c0_12, %c0_13] : memref<128x128xbf16, #tpu.memory_space<vmem>>, vector<128x128xbf16>
      tpu.vector_store %arg5[%c0_12, %c0_13], %13 {strides = array<i32>} : memref<128x128xbf16, #tpu.memory_space<vmem>>, vector<128x128xbf16>,
    } else {
    }
    return
  }
  func.func @transform_0(%arg0: i32, %arg1: i32, %arg2: i32) -> (i32, i32) {
    %c0_i32 = arith.constant 0 : i32
    return %arg0, %arg2 : i32, i32
  }
  func.func @transform_1(%arg0: i32, %arg1: i32, %arg2: i32) -> (i32, i32) {
    %c0_i32 = arith.constant 0 : i32
    return %arg2, %arg1 : i32, i32
  }
  func.func @transform_2(%arg0: i32, %arg1: i32, %arg2: i32) -> (i32, i32) {
    %c0_i32 = arith.constant 0 : i32
    return %arg0, %arg1 : i32, i32
  }
}

</mosaic_0001>

<bundles_post_ra>
// kernel: tpu_custom_call.1
= control target key start
LH: loop header
LB: loop body
LE: loop exit
PB: predicated region body
PF: predicated region fallthrough
CT: control target
= control target key end

     0   :  { %7 = vsyncpa [#allocation4], 0  ;;  %s888_s0 = inlined_call_operand.hbm [shape: bf16[128,256], index: 0, kind: input, shape index: {}]   ;;  %s889_s1 = inlined_call_operand.hbm [shape: bf16[256,128], index: 1, kind: input, shape index: {}]   ;;  %s890_s2 = inlined_call_operand.hbm [shape: bf16[128,128], index: 2, kind: output, shape index: {}]  }
   0x1   :  { %8 = vsyncpa [#allocation7], 0 }
   0x2   :  { %9 = vsyncpa [#allocation5], 0  ;;  %s851_s9 = smov [#allocation3]  }
   0x3   :  { %s15_s10 = sshll.u32 %s851_s9, 4  ;;  %s16_s10 = int_to_ptr.vmem [resolvable:$true] %s15_s10 }
   0x4   :  { %s793_s11 = scalar_lea.vmem %s16_s10, 2048  ;;  %p798_p1 = scmp.lt.s32.totalorder %s16_s10, %s16_s10 }
   0x5   :  { %p794_p0 = scmp.ne.s32.totalorder %s16_s10, %s793_s11  ;;  %p799_p2 = scmp.lt.s32.totalorder %s793_s11, %s793_s11 }
   0x7   :  { %p800_p3 = por %p799_p2, %p798_p1 }
   0x9   :  { %p801_p4 = pnand %p800_p3, %p794_p0 }
   0xb   :  { %804 = shalt.err (!%p801_p4)
}
   0xc   :  { %s852_s12 = smov 128   ;;  %s853_s13 = smov 8  }
   0xd   :  { %21 = dma.hbm_to_vmem [thread:$0]  %s888_s0, 2048, %s16_s10, [#allocation4], %s852_s12, %s852_s12, %s853_s13  }
   0xe   :  { %s854_s16 = smov [#allocation6]  }
   0xf   :  { %s27_s17 = sshll.u32 %s854_s16, 4  ;;  %s28_s17 = int_to_ptr.vmem [resolvable:$true] %s27_s17 }
  0x10   :  { %s813_s18 = scalar_lea.vmem %s28_s17, 2048  ;;  %p818_p6 = scmp.lt.s32.totalorder %s28_s17, %s28_s17 }
  0x11   :  { %p814_p5 = scmp.ne.s32.totalorder %s28_s17, %s813_s18  ;;  %p819_p7 = scmp.lt.s32.totalorder %s813_s18, %s813_s18 }
  0x13   :  { %p820_p8 = por %p819_p7, %p818_p6 }
  0x15   :  { %p821_p9 = pnand %p820_p8, %p814_p5 }
  0x17   :  { %824 = shalt.err (!%p821_p9)
}
  0x18   :  { %s855_s19 = smov 64   ;;  %s856_s20 = smov 4  }
  0x19   :  { %33 = dma.hbm_to_vmem [thread:$0]  %s889_s1, 2048, %s28_s17, [#allocation7], %s855_s19, %s855_s19, %s856_s20  }
  0x1a   :  { %845 = dma.done.wait [#allocation4], 2048  }
  0x1b   :  { %846 = vsyncadd [#allocation4], 4294965248 }
  0x1c   :  { %847 = dma.done.wait [#allocation7], 2048  }
  0x1d   :  { %848 = vsyncadd [#allocation7], 4294965248  ;;  %v745_v0 = vld [vmem:[#allocation6 + $0x78] sm:$0xff]   ;;  %v747_v2 = vld [vmem:[#allocation6 + $0x70] sm:$0xff]   ;;  %s857_s0 = smov [#allocation8]  }
  0x1e   :  { %v746_v1 = vld [vmem:[#allocation6 + $0x38] sm:$0xff]   ;;  %658 = vmatprep.subr.bf16.mxu0 %v745_v0  ;;  %722 = vmatprep.subr.bf16.mxu1 %v745_v0  ;;  %v748_v3 = vld [vmem:[#allocation6 + $0x30] sm:$0xff]   ;;  %v749_v4 = vld [vmem:[#allocation6 + $0x68] sm:$0xff]   ;;  %s534_s1 = sshll.u32 %s857_s0, 4  ;;  %s535_s1 = int_to_ptr.vmem [resolvable:$true] %s534_s1 }
  0x1f   :  { %659 = vmatpush3.bf16.msra.mxu0 %v746_v1  ;;  %730 = vmatpush3.bf16.msra.mxu1 %v746_v1  ;;  %v750_v5 = vld [vmem:[#allocation6 + $0x28] sm:$0xff]   ;;  %v751_v6 = vld [vmem:[#allocation6 + $0x60] sm:$0xff]   ;;  %v753_v8 = vld [vmem:[#allocation6 + $0x58] sm:$0xff]   ;;  %s825_s23 = scalar_lea.vmem %s535_s1, 1024  ;;  %p830_p11 = scmp.lt.s32.totalorder %s535_s1, %s535_s1 }
  0x20   :  { %660 = vmatprep.subr.bf16.mxu0 %v747_v2  ;;  %723 = vmatprep.subr.bf16.mxu1 %v747_v2  ;;  %v752_v7 = vld [vmem:[#allocation6 + $0x20] sm:$0xff]   ;;  %v754_v9 = vld [vmem:[#allocation6 + $0x18] sm:$0xff]   ;;  %v755_v10 = vld [vmem:[#allocation6 + $0x50] sm:$0xff]   ;;  %p826_p10 = scmp.ne.s32.totalorder %s535_s1, %s825_s23  ;;  %p831_p12 = scmp.lt.s32.totalorder %s825_s23, %s825_s23 }
  0x21   :  { %v763_v11 = vld [vmem:[#allocation3 + $0x4] ss:$8 sps:$4 sm:$0xff]   ;;  %v756_v13 = vld [vmem:[#allocation6 + $0x10] sm:$0xff]   ;;  %v761_v18 = vld [vmem:[#allocation3] ss:$8 sps:$4 sm:$0xff]  }
  0x22   :  { %v766_v12 = vld [vmem:[#allocation3 + $0x44] ss:$8 sps:$4 sm:$0xff]   ;;  %333 = vmatprep.mubr.bf16.mxu0 %v763_v11  ;;  %v764_v19 = vld [vmem:[#allocation3 + $0x40] ss:$8 sps:$4 sm:$0xff]   ;;  %v767_v20 = vld [vmem:[#allocation3 + $0x14] ss:$8 sps:$4 sm:$0xff]   ;;  %p832_p13 = por %p831_p12, %p830_p11 }
  0x23   :  { %661 = vmatpush3.bf16.msra.mxu0 %v748_v3  ;;  %731 = vmatpush3.bf16.msra.mxu1 %v748_v3  ;;  %v757_v14 = vld [vmem:[#allocation6 + $0x48] sm:$0xff]   ;;  %v759_v16 = vld [vmem:[#allocation6 + $0x40] sm:$0xff]   ;;  %v769_v21 = vld [vmem:[#allocation3 + $0x54] ss:$8 sps:$4 sm:$0xff]  }
  0x24   :  { %662 = vmatprep.subr.bf16.mxu0 %v749_v4  ;;  %724 = vmatprep.subr.bf16.mxu1 %v749_v4  ;;  %v758_v15 = vld [vmem:[#allocation6 + $0x8] sm:$0xff]   ;;  %v760_v17 = vld [vmem:[#allocation6] sm:$0xff]   ;;  %v771_v22 = vld [vmem:[#allocation3 + $0x10] ss:$8 sps:$4 sm:$0xff]   ;;  %p833_p0 = pnand %p832_p13, %p826_p10 }
  0x25   :  { %365 = vmatprep.mubr.bf16.mxu1 %v766_v12  ;;  %v772_v23 = vld [vmem:[#allocation3 + $0x50] ss:$8 sps:$4 sm:$0xff]   ;;  %v773_v24 = vld [vmem:[#allocation3 + $0x24] ss:$8 sps:$4 sm:$0xff]   ;;  %v777_v26 = vld [vmem:[#allocation3 + $0x20] ss:$8 sps:$4 sm:$0xff]  }
  0x26   :  { %v775_v25 = vld [vmem:[#allocation3 + $0x64] ss:$8 sps:$4 sm:$0xff]   ;;  %v778_v27 = vld [vmem:[#allocation3 + $0x60] ss:$8 sps:$4 sm:$0xff]   ;;  %v779_v28 = vld [vmem:[#allocation3 + $0x34] ss:$8 sps:$4 sm:$0xff]  }
  0x27   :  { %663 = vmatpush3.bf16.msra.mxu0 %v750_v5  ;;  %732 = vmatpush3.bf16.msra.mxu1 %v750_v5  ;;  %v781_v29 = vld [vmem:[#allocation3 + $0x74] ss:$8 sps:$4 sm:$0xff]   ;;  %v783_v30 = vld [vmem:[#allocation3 + $0x30] ss:$8 sps:$4 sm:$0xff]  }
  0x28   :  { %664 = vmatprep.subr.bf16.mxu0 %v751_v6  ;;  %725 = vmatprep.subr.bf16.mxu1 %v751_v6  ;;  %v784_v31 = vld [vmem:[#allocation3 + $0x70] ss:$8 sps:$4 sm:$0xff]  }
  0x2b   :  { %665 = vmatpush3.bf16.msra.mxu0 %v752_v7  ;;  %733 = vmatpush3.bf16.msra.mxu1 %v752_v7 }
  0x2c   :  { %666 = vmatprep.subr.bf16.mxu0 %v753_v8  ;;  %726 = vmatprep.subr.bf16.mxu1 %v753_v8 }
  0x2f   :  { %667 = vmatpush3.bf16.msra.mxu0 %v754_v9  ;;  %734 = vmatpush3.bf16.msra.mxu1 %v754_v9 }
  0x30   :  { %668 = vmatprep.subr.bf16.mxu0 %v755_v10  ;;  %727 = vmatprep.subr.bf16.mxu1 %v755_v10 }
  0x33   :  { %669 = vmatpush3.bf16.msra.mxu0 %v756_v13  ;;  %735 = vmatpush3.bf16.msra.mxu1 %v756_v13 }
  0x34   :  { %670 = vmatprep.subr.bf16.mxu0 %v757_v14  ;;  %728 = vmatprep.subr.bf16.mxu1 %v757_v14 }
  0x37   :  { %671 = vmatpush3.bf16.msra.mxu0 %v758_v15  ;;  %736 = vmatpush3.bf16.msra.mxu1 %v758_v15 }
  0x38   :  { %672 = vmatprep.subr.bf16.mxu0 %v759_v16  ;;  %729 = vmatprep.subr.bf16.mxu1 %v759_v16 }
  0x3b   :  { %673 = vmatpush3.bf16.msra.mxu0 %v760_v17  ;;  %737 = vmatpush3.bf16.msra.mxu1 %v760_v17 }
  0x3e   :  { %334 = vmatmul.mubr.bf16.vlgmr.msra.gmra.mxu0 %v761_v18  ;;  %366 = vmatmul.mubr.bf16.vlgmr.msra.gmra.mxu1 %v764_v19 }
  0x3f   :  { %341 = vmatprep.mubr.bf16.mxu0 %v767_v20  ;;  %373 = vmatprep.mubr.bf16.mxu1 %v769_v21 }
  0x46   :  { %342 = vmatmul.mubr.bf16.gmra.mxu0 %v771_v22  ;;  %374 = vmatmul.mubr.bf16.gmra.mxu1 %v772_v23 }
  0x47   :  { %349 = vmatprep.mubr.bf16.mxu0 %v773_v24  ;;  %381 = vmatprep.mubr.bf16.mxu1 %v775_v25 }
  0x4e   :  { %350 = vmatmul.mubr.bf16.gmra.mxu0 %v777_v26  ;;  %382 = vmatmul.mubr.bf16.gmra.mxu1 %v778_v27 }
  0x4f   :  { %357 = vmatprep.mubr.bf16.mxu0 %v779_v28  ;;  %389 = vmatprep.mubr.bf16.mxu1 %v781_v29 }
  0x56   :  { %358 = vmatmul.mubr.bf16.gmra.mxu0 %v783_v30  ;;  %390 = vmatmul.mubr.bf16.gmra.mxu1 %v784_v31 }
  0xfe   :  { %v674_v32 = vpop.f32.mrf.mxu0  ;;  %v698_v33 = vpop.f32.mrf.mxu1 }
 0x100   :  { %v675_v34 = vpop.f32.mrf.mxu0  ;;  %v699_v35 = vpop.f32.mrf.mxu1 }
 0x101   :  { %v676_v40 = vadd.f32 %v675_v34, %v674_v32  ;;  %v700_v41 = vadd.f32 %v699_v35, %v698_v33 }
 0x102   :  { %v677_v36 = vpop.f32.mrf.mxu0  ;;  %v701_v37 = vpop.f32.mrf.mxu1 }
 0x104   :  { %v678_v38 = vpop.f32.mrf.mxu0  ;;  %v702_v39 = vpop.f32.mrf.mxu1 }
 0x105   :  { %v679_v42 = vadd.f32 %v678_v38, %v677_v36  ;;  %v703_v43 = vadd.f32 %v702_v39, %v701_v37 }
 0x106   :  { %v680_v44 = vpop.f32.mrf.mxu0  ;;  %v704_v45 = vpop.f32.mrf.mxu1 }
 0x107   :  { %v614_v46 = vpack.c.bf16 %v679_v42, %v676_v40  ;;  %v634_v47 = vpack.c.bf16 %v703_v43, %v700_v41 }
 0x108   :  { %v681_v48 = vpop.f32.mrf.mxu0  ;;  %v705_v49 = vpop.f32.mrf.mxu1 }
 0x109   :  { %615 = vst [vmem:[#allocation8] sm:$0xff] %v614_v46   ;;  %654 = vst [vmem:[#allocation8 + $0x20] sm:$0xff] %v634_v47   ;;  %v682_v54 = vadd.f32 %v681_v48, %v680_v44  ;;  %v706_v55 = vadd.f32 %v705_v49, %v704_v45 }
 0x10a   :  { %v683_v50 = vpop.f32.mrf.mxu0  ;;  %v707_v51 = vpop.f32.mrf.mxu1 }
 0x10c   :  { %v684_v52 = vpop.f32.mrf.mxu0  ;;  %v708_v53 = vpop.f32.mrf.mxu1 }
 0x10d   :  { %v685_v56 = vadd.f32 %v684_v52, %v683_v50  ;;  %v709_v57 = vadd.f32 %v708_v53, %v707_v51 }
 0x10e   :  { %v686_v58 = vpop.f32.mrf.mxu0  ;;  %v710_v59 = vpop.f32.mrf.mxu1 }
 0x10f   :  { %v619_v60 = vpack.c.bf16 %v685_v56, %v682_v54  ;;  %v639_v61 = vpack.c.bf16 %v709_v57, %v706_v55 }
 0x110   :  { %v687_v62 = vpop.f32.mrf.mxu0  ;;  %v711_v63 = vpop.f32.mrf.mxu1 }
 0x111   :  { %651 = vst [vmem:[#allocation8 + $0x8] sm:$0xff] %v619_v60   ;;  %655 = vst [vmem:[#allocation8 + $0x28] sm:$0xff] %v639_v61   ;;  %v688_v4 = vadd.f32 %v687_v62, %v686_v58  ;;  %v712_v5 = vadd.f32 %v711_v63, %v710_v59 }
 0x112   :  { %v689_v0 = vpop.f32.mrf.mxu0  ;;  %v713_v1 = vpop.f32.mrf.mxu1 }
 0x114   :  { %v690_v2 = vpop.f32.mrf.mxu0  ;;  %v714_v3 = vpop.f32.mrf.mxu1 }
 0x115   :  { %v691_v6 = vadd.f32 %v690_v2, %v689_v0  ;;  %v715_v7 = vadd.f32 %v714_v3, %v713_v1 }
 0x116   :  { %v692_v8 = vpop.f32.mrf.mxu0  ;;  %v716_v9 = vpop.f32.mrf.mxu1 }
 0x117   :  { %v624_v10 = vpack.c.bf16 %v691_v6, %v688_v4  ;;  %v644_v11 = vpack.c.bf16 %v715_v7, %v712_v5 }
 0x118   :  { %v693_v12 = vpop.f32.mrf.mxu0  ;;  %v717_v13 = vpop.f32.mrf.mxu1 }
 0x119   :  { %652 = vst [vmem:[#allocation8 + $0x10] sm:$0xff] %v624_v10   ;;  %656 = vst [vmem:[#allocation8 + $0x30] sm:$0xff] %v644_v11   ;;  %v694_v18 = vadd.f32 %v693_v12, %v692_v8  ;;  %v718_v19 = vadd.f32 %v717_v13, %v716_v9 }
 0x11a   :  { %v695_v14 = vpop.f32.mrf.mxu0  ;;  %v719_v15 = vpop.f32.mrf.mxu1 }
 0x11c   :  { %v696_v16 = vpop.f32.mrf.mxu0  ;;  %v720_v17 = vpop.f32.mrf.mxu1 }
 0x11d   :  { %v697_v20 = vadd.f32 %v696_v16, %v695_v14  ;;  %v721_v21 = vadd.f32 %v720_v17, %v719_v15 }
 0x11f   :  { %v629_v22 = vpack.c.bf16 %v697_v20, %v694_v18  ;;  %v649_v23 = vpack.c.bf16 %v721_v21, %v718_v19 }
 0x121   :  { %653 = vst [vmem:[#allocation8 + $0x18] sm:$0xff] %v629_v22   ;;  %657 = vst [vmem:[#allocation8 + $0x38] sm:$0xff] %v649_v23  }
 0x122   :  { %836 = shalt.err (!%p833_p0)
}
 0x123   :  { %540 = dma.vmem_to_hbm [thread:$0]  %s535_s1, 1024, %s890_s2, [#allocation5], %s855_s19, %s855_s19, %s856_s20  }
 0x124   :  { %849 = dma.done.wait [#allocation5], 1024  }
 0x125   :  { %850 = vsyncadd [#allocation5], 4294966272 }
 0x126   :  { %544 = vsyncpa [#allocation4], 1 }
 0x127   :  { %545 = vsyncpa [#allocation7], 1 }
 0x128   :  { %546 = vsyncpa [#allocation5], 1 }

</bundles_post_ra>
